<compile_context>
chip_gen: v7x
topology: tpu7x:2x2x1
jax: 0.10.0
libtpu: 0.0.40
codegen_flags: <defaults>
</compile_context>

<pallas_src>
import functools

import jax
import jax.numpy as jnp
from jax.experimental import pallas as pl
from jax.experimental.pallas import tpu as pltpu


def _round_up(x, m):
    return ((x + m - 1) // m) * m


def _layout(s_dim, c_dim, hidden):
    """Static row layout of the packed parameter blob (lane width = Hp)."""
    h2 = 2 * hidden
    hp = _round_up(h2, 128)          # fused hidden width padded to lane tiles
    sp = _round_up(s_dim, 8)
    cp = _round_up(c_dim, 8)
    o_w1s = 0
    o_w1c = o_w1s + sp
    o_b1 = o_w1c + cp
    o_w2 = o_b1 + 8
    o_b2 = o_w2 + hp
    o_w3 = o_b2 + 8
    o_b3 = o_w3 + hp
    rows = o_b3 + 8
    return dict(S=s_dim, C=c_dim, H=hidden, H2=h2, Hp=hp, Sp=sp, Cp=cp,
                o_w1s=o_w1s, o_w1c=o_w1c, o_b1=o_b1, o_w2=o_w2,
                o_b2=o_b2, o_w3=o_w3, o_b3=o_b3, rows=rows)


def pack_double_v_params(params_v1, params_v2, s_dim):
    """Fuse the two heads' params into one (rows, Hp) f32, (8,128)-aligned blob."""
    w1a, b1a, w2a, b2a, w3a, b3a = [jnp.asarray(p, jnp.float32) for p in params_v1]
    w1b, b1b, w2b, b2b, w3b, b3b = [jnp.asarray(p, jnp.float32) for p in params_v2]
    d, h = w1a.shape
    c_dim = d - s_dim
    lay = _layout(s_dim, c_dim, h)
    h2, hp = lay["H2"], lay["Hp"]

    # Fused first layer, split into state / condition parts (no wrapper concat).
    w1f = jnp.concatenate([w1a, w1b], axis=1)            # [D, 2H]
    w1s = w1f[:s_dim]                                    # [S, 2H]
    w1c = w1f[s_dim:]                                    # [C, 2H]
    b1f = jnp.concatenate([b1a.reshape(1, h), b1b.reshape(1, h)], axis=1)

    # Block-diagonal fused second layer.
    w2f = jnp.zeros((h2, h2), jnp.float32)
    w2f = w2f.at[:h, :h].set(w2a)
    w2f = w2f.at[h:, h:].set(w2b)
    b2f = jnp.concatenate([b2a.reshape(1, h), b2b.reshape(1, h)], axis=1)

    # Fused output projection: col 0 = head 1, col 1 = head 2.
    w3f = jnp.zeros((h2, 2), jnp.float32)
    w3f = w3f.at[:h, 0:1].set(w3a.reshape(h, 1))
    w3f = w3f.at[h:, 1:2].set(w3b.reshape(h, 1))
    b3f = jnp.concatenate([b3a.reshape(1, 1), b3b.reshape(1, 1)], axis=1)

    def pad2(a, rows, cols=hp):
        return jnp.pad(a, ((0, rows - a.shape[0]), (0, cols - a.shape[1])))

    blob = jnp.concatenate([
        pad2(w1s, lay["Sp"]),
        pad2(w1c, lay["Cp"]),
        pad2(b1f, 8),
        pad2(w2f, hp),
        pad2(b2f, 8),
        pad2(w3f, hp),
        pad2(b3f, 8),
    ], axis=0)
    assert blob.shape == (lay["rows"], hp)
    return blob, lay


def _double_v_kernel(s_ref, c_ref, blob_ref, out_ref, *, layout):
    lay = layout
    bf16 = jnp.bfloat16
    f32 = jnp.float32

    s = s_ref[...].astype(bf16)
    c = c_ref[...].astype(bf16)

    # Static, zero-cost views into the single VMEM-resident parameter blob.
    w1s = blob_ref[lay["o_w1s"]:lay["o_w1s"] + lay["S"], :].astype(bf16)
    w1c = blob_ref[lay["o_w1c"]:lay["o_w1c"] + lay["C"], :].astype(bf16)
    b1 = blob_ref[lay["o_b1"]:lay["o_b1"] + 1, :]
    w2 = blob_ref[lay["o_w2"]:lay["o_w2"] + lay["Hp"], :].astype(bf16)
    b2 = blob_ref[lay["o_b2"]:lay["o_b2"] + 1, :]
    w3 = blob_ref[lay["o_w3"]:lay["o_w3"] + lay["Hp"], :].astype(bf16)
    b3 = blob_ref[lay["o_b3"]:lay["o_b3"] + 1, :]

    # Layer 1 (concat folded into two dots), bf16 operands, f32 accumulation.
    h = (jnp.dot(s, w1s, preferred_element_type=f32)
         + jnp.dot(c, w1c, preferred_element_type=f32)
         + b1)
    h = jnp.maximum(h, 0.0)
    # Layer 2: block-diagonal fused weight (zero padding is free on the MXU).
    h = jnp.dot(h.astype(bf16), w2, preferred_element_type=f32) + b2
    h = jnp.maximum(h, 0.0)
    # Layer 3: [B, 2] useful columns (v1, v2) inside the padded result.
    r = jnp.dot(h.astype(bf16), w3, preferred_element_type=f32) + b3

    out_ref[...] = jnp.minimum(r[:, 0:1], r[:, 1:2]).astype(out_ref.dtype)


def double_v_forward(state, condition, blob, layout, *, block_b=256):
    """min(v1(state, cond), v2(state, cond)) -> [B, 1] (f32)."""
    state = jnp.asarray(state, jnp.float32)
    condition = jnp.asarray(condition, jnp.float32)
    b, s_dim = state.shape
    bc, c_dim = condition.shape
    assert b == bc and s_dim == layout["S"] and c_dim == layout["C"]

    hp = layout["Hp"]
    h2 = layout["H2"]
    rows = layout["rows"]

    # Batch tile: whole batch if small, else 256 rows (multiple of 8; well
    # inside v7x's 64 MiB VMEM -- ~0.25 MiB of activations per block).
    tb = b if b <= block_b else block_b
    grid_b = pl.cdiv(b, tb)

    cost = pl.CostEstimate(
        flops=2 * b * ((s_dim + c_dim) * h2 + h2 * h2 + 2 * h2),
        transcendentals=0,
        bytes_accessed=4 * (state.size + condition.size + blob.size + b),
    )

    kernel = functools.partial(_double_v_kernel, layout=layout)

    return pl.pallas_call(
        kernel,
        out_shape=jax.ShapeDtypeStruct((b, 1), jnp.float32),
        grid=(grid_b,),
        in_specs=[
            pl.BlockSpec((tb, s_dim), lambda i: (i, 0)),
            pl.BlockSpec((tb, c_dim), lambda i: (i, 0)),
            # Constant block index -> single DMA, weights stay VMEM-resident.
            pl.BlockSpec((rows, hp), lambda i: (0, 0)),
        ],
        out_specs=pl.BlockSpec((tb, 1), lambda i: (i, 0)),
        compiler_params=pltpu.CompilerParams(
            dimension_semantics=("parallel",)),
        cost_estimate=cost,
    )(state, condition, blob)


def _init_mlp_params(key, in_dim, hidden_dim, out_dim):
    """Deterministic (PRNGKey-derived) init for a 3-layer MLP."""
    k1, k2, k3 = jax.random.split(key, 3)
    scale = 0.1
    w1 = scale * jax.random.normal(k1, (in_dim, hidden_dim), jnp.float32)
    b1 = jnp.zeros((1, hidden_dim), jnp.float32)
    w2 = scale * jax.random.normal(k2, (hidden_dim, hidden_dim), jnp.float32)
    b2 = jnp.zeros((1, hidden_dim), jnp.float32)
    w3 = scale * jax.random.normal(k3, (hidden_dim, out_dim), jnp.float32)
    b3 = jnp.zeros((1, out_dim), jnp.float32)
    return (w1, b1, w2, b2, w3, b3)


def _reference_forward(state, condition, params_v1, params_v2):
    x = jnp.concatenate([state, condition], axis=-1).astype(jnp.float32)

    def mlp(p):
        w1, b1, w2, b2, w3, b3 = p
        h = jnp.maximum(x @ w1 + b1, 0.0)
        h = jnp.maximum(h @ w2 + b2, 0.0)
        return h @ w3 + b3

    return jnp.minimum(mlp(params_v1), mlp(params_v2))


if __name__ == "__main__":
    key = jax.random.PRNGKey(0)
    k_state, k_cond, k_p1, k_p2 = jax.random.split(key, 4)

    B = 8           # batch
    S_DIM = 24      # state feature dim
    C_DIM = 8       # condition feature dim
    HIDDEN = 32     # MLP hidden width
    IN_DIM = S_DIM + C_DIM

    state = jax.random.normal(k_state, (B, S_DIM), jnp.float32)
    condition = jax.random.normal(k_cond, (B, C_DIM), jnp.float32)

    params_v1 = _init_mlp_params(k_p1, IN_DIM, HIDDEN, 1)
    params_v2 = _init_mlp_params(k_p2, IN_DIM, HIDDEN, 1)

    blob, layout = pack_double_v_params(params_v1, params_v2, s_dim=S_DIM)

    out = double_v_forward(state, condition, blob, layout)
    out = jax.block_until_ready(out)

    ref = _reference_forward(state, condition, params_v1, params_v2)
    assert out.shape == (B, 1)
    # bf16 MXU operands (f32 accumulation) -> relaxed tolerance vs f32 reference.
    assert jnp.allclose(out, ref, atol=2e-2, rtol=2e-2), "mismatch vs reference"

    print("KERNEL_OK")
</pallas_src>

<mosaic_0001>
module attributes {stable_mosaic.version = 11 : i64} {
  func.func @_double_v_kernel(%arg0: i32, %arg1: memref<8x24xf32, #tpu.memory_space<vmem>>, %arg2: memref<8x8xf32, #tpu.memory_space<vmem>>, %arg3: memref<312x128xf32, #tpu.memory_space<vmem>>, %arg4: memref<8x1xf32, #tpu.memory_space<vmem>>) attributes {dimension_semantics = [#tpu.dimension_semantics<parallel>], iteration_bounds = array<i64: 1>, scalar_prefetch = 0 : i64, scratch_operands = 0 : i64, tpu.core_type = #tpu.core_type<tc>, window_params = [{transform_indices = @transform_0, window_bounds = array<i64: 8, 24>}, {transform_indices = @transform_1, window_bounds = array<i64: 8, 8>}, {pipeline_mode = #tpu.pipeline_mode<synchronous>, transform_indices = @transform_2, window_bounds = array<i64: 312, 128>}, {transform_indices = @transform_3, window_bounds = array<i64: 8, 1>}]} {
    %c0 = arith.constant 0 : index
    %c0_0 = arith.constant 0 : index
    %0 = vector.load %arg1[%c0, %c0_0] : memref<8x24xf32, #tpu.memory_space<vmem>>, vector<8x24xf32>
    %1 = arith.truncf %0 : vector<8x24xf32> to vector<8x24xbf16>
    %c0_1 = arith.constant 0 : index
    %c0_2 = arith.constant 0 : index
    %2 = vector.load %arg2[%c0_1, %c0_2] : memref<8x8xf32, #tpu.memory_space<vmem>>, vector<8x8xf32>
    %3 = arith.truncf %2 : vector<8x8xf32> to vector<8x8xbf16>
    %c0_3 = arith.constant 0 : index
    %c0_4 = arith.constant 0 : index
    %4 = vector.load %arg3[%c0_3, %c0_4] : memref<312x128xf32, #tpu.memory_space<vmem>>, vector<24x128xf32>
    %5 = arith.truncf %4 : vector<24x128xf32> to vector<24x128xbf16>
    %c24 = arith.constant 24 : index
    %c0_5 = arith.constant 0 : index
    %6 = vector.load %arg3[%c24, %c0_5] : memref<312x128xf32, #tpu.memory_space<vmem>>, vector<8x128xf32>
    %7 = arith.truncf %6 : vector<8x128xf32> to vector<8x128xbf16>
    %c32 = arith.constant 32 : index
    %c0_6 = arith.constant 0 : index
    %8 = vector.load %arg3[%c32, %c0_6] : memref<312x128xf32, #tpu.memory_space<vmem>>, vector<1x128xf32>
    %c40 = arith.constant 40 : index
    %c0_7 = arith.constant 0 : index
    %9 = vector.load %arg3[%c40, %c0_7] : memref<312x128xf32, #tpu.memory_space<vmem>>, vector<128x128xf32>
    %10 = arith.truncf %9 : vector<128x128xf32> to vector<128x128xbf16>
    %c168 = arith.constant 168 : index
    %c0_8 = arith.constant 0 : index
    %11 = vector.load %arg3[%c168, %c0_8] : memref<312x128xf32, #tpu.memory_space<vmem>>, vector<1x128xf32>
    %c176 = arith.constant 176 : index
    %c0_9 = arith.constant 0 : index
    %12 = vector.load %arg3[%c176, %c0_9] : memref<312x128xf32, #tpu.memory_space<vmem>>, vector<128x128xf32>
    %13 = arith.truncf %12 : vector<128x128xf32> to vector<128x128xbf16>
    %c304 = arith.constant 304 : index
    %c0_10 = arith.constant 0 : index
    %14 = vector.load %arg3[%c304, %c0_10] : memref<312x128xf32, #tpu.memory_space<vmem>>, vector<1x128xf32>
    %cst = arith.constant dense<0.000000e+00> : vector<8x128xf32>
    %15 = tpu.matmul %1, %5, %cst {dimension_numbers = #tpu.dot_dimension_numbers<[1], [0], [0], [1], [0, 0, 1, 1], [], []>} : vector<8x24xbf16>, vector<24x128xbf16>, vector<8x128xf32> -> vector<8x128xf32>
    %cst_11 = arith.constant dense<0.000000e+00> : vector<8x128xf32>
    %16 = tpu.matmul %3, %7, %cst_11 {dimension_numbers = #tpu.dot_dimension_numbers<[1], [0], [0], [1], [0, 0, 1, 1], [], []>} : vector<8x8xbf16>, vector<8x128xbf16>, vector<8x128xf32> -> vector<8x128xf32>
    %17 = arith.addf %15, %16 : vector<8x128xf32>
    %18 = vector.broadcast %8 : vector<1x128xf32> to vector<8x128xf32>
    %19 = arith.addf %17, %18 : vector<8x128xf32>
    %cst_12 = arith.constant 0.000000e+00 : f32
    %20 = vector.broadcast %cst_12 : f32 to vector<8x128xf32>
    %21 = arith.maximumf %19, %20 : vector<8x128xf32>
    %22 = arith.truncf %21 : vector<8x128xf32> to vector<8x128xbf16>
    %cst_13 = arith.constant dense<0.000000e+00> : vector<8x128xf32>
    %23 = tpu.matmul %22, %10, %cst_13 {dimension_numbers = #tpu.dot_dimension_numbers<[1], [0], [0], [1], [0, 0, 1, 1], [], []>} : vector<8x128xbf16>, vector<128x128xbf16>, vector<8x128xf32> -> vector<8x128xf32>
    %24 = vector.broadcast %11 : vector<1x128xf32> to vector<8x128xf32>
    %25 = arith.addf %23, %24 : vector<8x128xf32>
    %cst_14 = arith.constant 0.000000e+00 : f32
    %26 = vector.broadcast %cst_14 : f32 to vector<8x128xf32>
    %27 = arith.maximumf %25, %26 : vector<8x128xf32>
    %28 = arith.truncf %27 : vector<8x128xf32> to vector<8x128xbf16>
    %cst_15 = arith.constant dense<0.000000e+00> : vector<8x128xf32>
    %29 = tpu.matmul %28, %13, %cst_15 {dimension_numbers = #tpu.dot_dimension_numbers<[1], [0], [0], [1], [0, 0, 1, 1], [], []>} : vector<8x128xbf16>, vector<128x128xbf16>, vector<8x128xf32> -> vector<8x128xf32>
    %30 = vector.broadcast %14 : vector<1x128xf32> to vector<8x128xf32>
    %31 = arith.addf %29, %30 : vector<8x128xf32>
    %32 = vector.extract_strided_slice %31 {offsets = [0, 0], sizes = [8, 1], strides = [1, 1]} : vector<8x128xf32> to vector<8x1xf32>
    %33 = vector.extract_strided_slice %31 {offsets = [0, 1], sizes = [8, 1], strides = [1, 1]} : vector<8x128xf32> to vector<8x1xf32>
    %34 = arith.minimumf %32, %33 : vector<8x1xf32>
    %c0_16 = arith.constant 0 : index
    %c0_17 = arith.constant 0 : index
    %35 = vector.load %arg4[%c0_16, %c0_17] : memref<8x1xf32, #tpu.memory_space<vmem>>, vector<8x1xf32>
    tpu.vector_store %arg4[%c0_16, %c0_17], %34 {strides = array<i32>} : memref<8x1xf32, #tpu.memory_space<vmem>>, vector<8x1xf32>,
    return
  }
  func.func @transform_0(%arg0: i32) -> (i32, i32) {
    %c0_i32 = arith.constant 0 : i32
    %c0_i32_0 = arith.constant 0 : i32
    return %arg0, %c0_i32 : i32, i32
  }
  func.func @transform_1(%arg0: i32) -> (i32, i32) {
    %c0_i32 = arith.constant 0 : i32
    %c0_i32_0 = arith.constant 0 : i32
    return %arg0, %c0_i32 : i32, i32
  }
  func.func @transform_2(%arg0: i32) -> (i32, i32) {
    %c0_i32 = arith.constant 0 : i32
    %c0_i32_0 = arith.constant 0 : i32
    %c0_i32_1 = arith.constant 0 : i32
    return %c0_i32, %c0_i32_0 : i32, i32
  }
  func.func @transform_3(%arg0: i32) -> (i32, i32) {
    %c0_i32 = arith.constant 0 : i32
    %c0_i32_0 = arith.constant 0 : i32
    return %arg0, %c0_i32 : i32, i32
  }
}

</mosaic_0001>

<bundles_post_ra>
// kernel: tpu_custom_call.1
= control target key start
LH: loop header
LB: loop body
LE: loop exit
PB: predicated region body
PF: predicated region fallthrough
CT: control target
= control target key end

     0   :  { %8 = vsyncpa [#allocation3], 0  ;;  %s573_s0 = inlined_call_operand.hbm [shape: f32[8,24], index: 0, kind: input, shape index: {}]   ;;  %s574_s1 = inlined_call_operand.hbm [shape: f32[8,8], index: 1, kind: input, shape index: {}]   ;;  %s575_s2 = inlined_call_operand.hbm [shape: f32[312,128], index: 2, kind: input, shape index: {}]   ;;  %s576_s3 = inlined_call_operand.vmem [shape: f32[8,1], index: 3, kind: output, shape index: {}]  }
   0x1   :  { %9 = vsyncpa [#allocation5], 0  ;;  %s479_s12 = smov [#allocation4]   ;;  %s480_s14 = smov [#allocation2]  }
   0x2   :  { %s26_s13 = sshll.u32 %s479_s12, 4  ;;  %s16_s15 = sshll.u32 %s480_s14, 4  ;;  %s27_s13 = int_to_ptr.vmem [resolvable:$true] %s26_s13  ;;  %s17_s15 = int_to_ptr.vmem [resolvable:$true] %s16_s15 }
   0x3   :  { %s409_s18 = scalar_lea.hbm %s574_s1, 128 }
   0x4   :  { %p410_p0 = scmp.ne.s32.totalorder %s574_s1, %s409_s18  ;;  %p413_p1 = scmp.lt.u32.totalorder %s409_s18, %s574_s1 }
   0x6   :  { %p415_p2 = pnand %p413_p1, %p410_p0 }
   0x8   :  { %418 = shalt.err (!%p415_p2)
}
   0x9   :  { %s419_s23 = scalar_lea.vmem %s27_s13, 128  ;;  %p424_p4 = scmp.lt.s32.totalorder %s27_s13, %s27_s13 }
   0xa   :  { %p420_p3 = scmp.ne.s32.totalorder %s27_s13, %s419_s23  ;;  %p425_p5 = scmp.lt.s32.totalorder %s419_s23, %s419_s23 }
   0xc   :  { %p426_p6 = por %p425_p5, %p424_p4 }
   0xe   :  { %p427_p7 = pnand %p426_p6, %p420_p3 }
  0x10   :  { %430 = shalt.err (!%p427_p7)
}
  0x11   :  { %29 = dma.hbm_to_vmem [thread:$0]  %s574_s1, 128, %s27_s13, [#allocation5]  }
  0x12   :  { %s431_s28 = scalar_lea.hbm %s573_s0, 128 }
  0x13   :  { %p432_p8 = scmp.ne.s32.totalorder %s573_s0, %s431_s28  ;;  %p435_p9 = scmp.lt.u32.totalorder %s431_s28, %s573_s0 }
  0x15   :  { %p437_p10 = pnand %p435_p9, %p432_p8 }
  0x17   :  { %440 = shalt.err (!%p437_p10)
}
  0x18   :  { %s441_s6 = scalar_lea.vmem %s17_s15, 128  ;;  %p446_p12 = scmp.lt.s32.totalorder %s17_s15, %s17_s15 }
  0x19   :  { %p442_p11 = scmp.ne.s32.totalorder %s17_s15, %s441_s6  ;;  %p447_p13 = scmp.lt.s32.totalorder %s441_s6, %s441_s6 }
  0x1b   :  { %p448_p0 = por %p447_p13, %p446_p12 }
  0x1d   :  { %p449_p1 = pnand %p448_p0, %p442_p11 }
  0x1f   :  { %452 = shalt.err (!%p449_p1)
}
  0x20   :  { %19 = dma.hbm_to_vmem [thread:$0]  %s573_s0, 128, %s17_s15, [#allocation3]  }
  0x21   :  { %s481_s8 = smov [#allocation6]   ;;  %s453_s12 = scalar_lea.hbm %s575_s2, 4992 }
  0x22   :  { %s35_s9 = sshll.u32 %s481_s8, 4  ;;  %p454_p2 = scmp.ne.s32.totalorder %s575_s2, %s453_s12  ;;  %s36_s9 = int_to_ptr.vmem [resolvable:$true] %s35_s9 }
  0x23   :  { %p457_p3 = scmp.lt.u32.totalorder %s453_s12, %s575_s2 }
  0x25   :  { %p459_p4 = pnand %p457_p3, %p454_p2 }
  0x27   :  { %462 = shalt.err (!%p459_p4)
}
  0x28   :  { %s463_s18 = scalar_lea.vmem %s36_s9, 4992  ;;  %p468_p6 = scmp.lt.s32.totalorder %s36_s9, %s36_s9 }
  0x29   :  { %p464_p5 = scmp.ne.s32.totalorder %s36_s9, %s463_s18  ;;  %p469_p7 = scmp.lt.s32.totalorder %s463_s18, %s463_s18 }
  0x2b   :  { %p470_p8 = por %p469_p7, %p468_p6 }
  0x2d   :  { %p471_p9 = pnand %p470_p8, %p464_p5 }
  0x2f   :  { %474 = shalt.err (!%p471_p9)
}
  0x30   :  { %s482_s0 = smov 128   ;;  %s483_s15 = smov 8  }
  0x31   :  { %41 = dma.hbm_to_vmem [thread:$0]  %s575_s2, 4992, %s36_s9, [#allocation5], %s482_s0, %s482_s0, %s483_s15  }
  0x32   :  { %475 = dma.done.wait [#allocation3], 128  }
  0x33   :  { %476 = vsyncadd [#allocation3], 4294967168 }
  0x34   :  { %477 = dma.done.wait [#allocation5], 5120  }
  0x35   :  { %478 = vsyncadd [#allocation5], 4294962176  ;;  %v484_v0 = vmov 0.0   ;;  %vm485_vm0 = vmmov 0   ;;  %v56_v1 = vld [vmem:[#allocation6] sm:$0xff]  ;;  %v57_v2 = vld [vmem:[#allocation6 + $0x8] sm:$0xff] }
  0x36   :  { %353 = vmatprep.subr.bf16.mxu1 %v484_v0  ;;  %347 = vmatprep.subr.bf16.mxu0 %v484_v0  ;;  %v61_v3 = vld [vmem:[#allocation6 + $0x18] sm:$0xff]  ;;  %vm118_vm1 = vcmask 1043456   ;;  %v59_v4 = vpack.c.bf16 %v57_v2, %v56_v1  ;;  %v58_v7 = vld [vmem:[#allocation6 + $0x10] sm:$0xff]  ;;  %v64_v9 = vld [vmem:[#allocation6 + $0x28] sm:$0xff]  ;;  %vm114_vm2 = vcmask 64512   ;;  %vm162_vm3 = vcmask 195584  }
  0x37   :  { %349 = vmatprep.mubr.msk.bf16.mxu0 %vm485_vm0, %v484_v0  ;;  %357 = vmatprep.mubr.msk.bf16.mxu1 %vm485_vm0, %v484_v0  ;;  %v62_v5 = vpack.c.bf16 %v61_v3, %v61_v3  ;;  %v54_v6 = vld [vmem:[#allocation4] sm:$0xff]  ;;  %v60_v8 = vpack.c.bf16 %v58_v7, %v58_v7  ;;  %v65_v10 = vld [vmem:[#allocation6 + $0x30] sm:$0xff]  ;;  %v67_v17 = vld [vmem:[#allocation6 + $0x40] sm:$0xff]  ;;  %s486_s2 = smov 127   ;;  %vm311_vm4 = vcmask 7168  }
  0x38   :  { %354 = vmatpush3.bf16.msra.mxu1 %v59_v4  ;;  %v55_v12 = vpack.c.bf16 %v54_v6, %v54_v6  ;;  %v52_v13 = vld [vmem:[#allocation2] sm:$0xff]  ;;  %v80_v15 = vpack.c.bf16 %v65_v10, %v64_v9  ;;  %v66_v16 = vld [vmem:[#allocation6 + $0x38] sm:$0xff]  ;;  %v68_v20 = vld [vmem:[#allocation6 + $0x48] sm:$0xff] }
  0x39   :  { %v120_v11 = vsel %vm118_vm1, %v62_v5, 0  ;;  %355 = vmatprep.subr.bf16.mxu1 %v484_v0  ;;  %v167_v14 = vsel %vm118_vm1, %v60_v8, 0  ;;  %v53_v18 = vpack.c.bf16 %v52_v13, %v52_v13  ;;  %v81_v19 = vpack.c.bf16 %v67_v17, %v66_v16  ;;  %v69_v21 = vld [vmem:[#allocation6 + $0x50] sm:$0xff]  ;;  %v70_v23 = vld [vmem:[#allocation6 + $0x58] sm:$0xff]  ;;  %v71_v24 = vld [vmem:[#allocation6 + $0x60] sm:$0xff] }
  0x3a   :  { %348 = vmatpush3.bf16.msra.mxu0 %v120_v11  ;;  %v82_v22 = vpack.c.bf16 %v69_v21, %v68_v20  ;;  %v83_v25 = vpack.c.bf16 %v71_v24, %v70_v23  ;;  %v72_v26 = vld [vmem:[#allocation6 + $0x68] sm:$0xff]  ;;  %v73_v27 = vld [vmem:[#allocation6 + $0x70] sm:$0xff]  ;;  %v74_v29 = vld [vmem:[#allocation6 + $0x78] sm:$0xff] }
  0x3b   :  { %361 = vmatprep.subr.bf16.mxu0 %v484_v0  ;;  %v84_v28 = vpack.c.bf16 %v73_v27, %v72_v26  ;;  %v75_v30 = vld [vmem:[#allocation6 + $0x80] sm:$0xff]  ;;  %v76_v32 = vld [vmem:[#allocation6 + $0x88] sm:$0xff]  ;;  %v77_v33 = vld [vmem:[#allocation6 + $0x90] sm:$0xff] }
  0x3c   :  { %356 = vmatpush3.bf16.msra.mxu1 %v167_v14  ;;  %v85_v31 = vpack.c.bf16 %v75_v30, %v74_v29  ;;  %v86_v34 = vpack.c.bf16 %v77_v33, %v76_v32  ;;  %v78_v35 = vld [vmem:[#allocation6 + $0x98] sm:$0xff]  ;;  %v79_v36 = vld [vmem:[#allocation6 + $0xa0] sm:$0xff]  ;;  %v89_v38 = vld [vmem:[#allocation6 + $0xb0] sm:$0xff] }
  0x3d   :  { %350 = vmatmul.mubr.msk.bf16.vlgmr.msra.gmra.mrb[0].mxu0 %vm114_vm2, %v55_v12  ;;  %381 = vmatprep.subr.bf16.mxu1 %v484_v0  ;;  %v87_v37 = vpack.c.bf16 %v79_v36, %v78_v35  ;;  %v90_v39 = vld [vmem:[#allocation6 + $0xb8] sm:$0xff]  ;;  %v91_v40 = vld [vmem:[#allocation6 + $0xc0] sm:$0xff]  ;;  %v92_v42 = vld [vmem:[#allocation6 + $0xc8] sm:$0xff] }
  0x3e   :  { %362 = vmatpush3.bf16.msra.mxu0 %v80_v15  ;;  %377 = vmatprep.mubr.msk.bf16.mxu0 %vm485_vm0, %v484_v0  ;;  %v105_v41 = vpack.c.bf16 %v90_v39, %v89_v38  ;;  %v106_v43 = vpack.c.bf16 %v92_v42, %v91_v40  ;;  %v93_v44 = vld [vmem:[#allocation6 + $0xd0] sm:$0xff]  ;;  %v94_v45 = vld [vmem:[#allocation6 + $0xd8] sm:$0xff]  ;;  %v95_v47 = vld [vmem:[#allocation6 + $0xe0] sm:$0xff] }
  0x3f   :  { %363 = vmatprep.subr.bf16.mxu0 %v484_v0  ;;  %358 = vmatmul.mubr.msk.bf16.vlgmr.msra.gmra.mrb[0].mxu1 %vm162_vm3, %v53_v18  ;;  %v107_v46 = vpack.c.bf16 %v94_v45, %v93_v44  ;;  %v96_v48 = vld [vmem:[#allocation6 + $0xe8] sm:$0xff]  ;;  %v97_v50 = vld [vmem:[#allocation6 + $0xf0] sm:$0xff]  ;;  %v98_v51 = vld [vmem:[#allocation6 + $0xf8] sm:$0xff] }
  0x40   :  { %397 = vmatprep.mubr.msk.bf16.mxu1 %vm485_vm0, %v484_v0  ;;  %382 = vmatpush3.bf16.msra.mxu1 %v105_v41  ;;  %v108_v49 = vpack.c.bf16 %v96_v48, %v95_v47  ;;  %v109_v52 = vpack.c.bf16 %v98_v51, %v97_v50  ;;  %v99_v53 = vld [vmem:[#allocation6 + $0x100] sm:$0xff]  ;;  %v100_v54 = vld [vmem:[#allocation6 + $0x108] sm:$0xff]  ;;  %v101_v6 = vld [vmem:[#allocation6 + $0x110] sm:$0xff] }
  0x41   :  { %383 = vmatprep.subr.bf16.mxu1 %v484_v0  ;;  %v110_v55 = vpack.c.bf16 %v100_v54, %v99_v53  ;;  %v321_v60 = vld [vmem:[#allocation6 + $0x20] ss:$0 sm:$0xff]  ;;  %v102_v7 = vld [vmem:[#allocation6 + $0x118] sm:$0xff]  ;;  %v104_v10 = vld [vmem:[#allocation6 + $0x128] sm:$0xff] }
  0x42   :  { %364 = vmatpush3.bf16.msra.mxu0 %v81_v19  ;;  %v111_v8 = vpack.c.bf16 %v102_v7, %v101_v6  ;;  %v103_v9 = vld [vmem:[#allocation6 + $0x120] sm:$0xff]  ;;  %v322_v12 = vld [vmem:[#allocation6 + $0xa8] ss:$0 sm:$0xff]  ;;  %v323_v20 = vld [vmem:[#allocation6 + $0x130] ss:$0 sm:$0xff] }
  0x43   :  { %365 = vmatprep.subr.bf16.mxu0 %v484_v0  ;;  %v112_v11 = vpack.c.bf16 %v104_v10, %v103_v9 }
  0x44   :  { %384 = vmatpush3.bf16.msra.mxu1 %v106_v43 }
  0x45   :  { %385 = vmatprep.subr.bf16.mxu1 %v484_v0 }
  0x46   :  { %366 = vmatpush3.bf16.msra.mxu0 %v82_v22 }
  0x47   :  { %367 = vmatprep.subr.bf16.mxu0 %v484_v0 }
  0x48   :  { %386 = vmatpush3.bf16.msra.mxu1 %v107_v46 }
  0x49   :  { %387 = vmatprep.subr.bf16.mxu1 %v484_v0 }
  0x4a   :  { %368 = vmatpush3.bf16.msra.mxu0 %v83_v25 }
  0x4b   :  { %369 = vmatprep.subr.bf16.mxu0 %v484_v0 }
  0x4c   :  { %388 = vmatpush3.bf16.msra.mxu1 %v108_v49 }
  0x4d   :  { %389 = vmatprep.subr.bf16.mxu1 %v484_v0 }
  0x4e   :  { %370 = vmatpush3.bf16.msra.mxu0 %v84_v28 }
  0x4f   :  { %371 = vmatprep.subr.bf16.mxu0 %v484_v0 }
  0x50   :  { %390 = vmatpush3.bf16.msra.mxu1 %v109_v52 }
  0x51   :  { %391 = vmatprep.subr.bf16.mxu1 %v484_v0 }
  0x52   :  { %372 = vmatpush3.bf16.msra.mxu0 %v85_v31 }
  0x53   :  { %373 = vmatprep.subr.bf16.mxu0 %v484_v0 }
  0x54   :  { %392 = vmatpush3.bf16.msra.mxu1 %v110_v55 }
  0x55   :  { %393 = vmatprep.subr.bf16.mxu1 %v484_v0 }
  0x56   :  { %374 = vmatpush3.bf16.msra.mxu0 %v86_v34 }
  0x57   :  { %375 = vmatprep.subr.bf16.mxu0 %v484_v0 }
  0x58   :  { %394 = vmatpush3.bf16.msra.mxu1 %v111_v8 }
  0x59   :  { %395 = vmatprep.subr.bf16.mxu1 %v484_v0 }
  0x5a   :  { %376 = vmatpush3.bf16.msra.mxu0 %v87_v37 }
  0x5c   :  { %396 = vmatpush3.bf16.msra.mxu1 %v112_v11 }
 0x110   :  { %v156_v56 = vpop.f32.mrb[0].mxu0 }
 0x111   :  { %v351_v57 = vpop.f32.mrb[1].mxu0 }
 0x112   :  { %v159_v58 = vpop.f32.mrb[2].mxu0  ;;  %v203_v61 = vpop.f32.mrb[0].mxu1 }
 0x113   :  { %v352_v59 = vpop.f32.mrb[3].mxu0  ;;  %v204_v62 = vadd.f32 %v203_v61, %v156_v56  ;;  %v359_v63 = vpop.f32.mrb[1].mxu1 }
 0x114   :  { %v206_v1 = vpop.f32.mrb[2].mxu1 }
 0x115   :  { %v213_v2 = vadd.f32 %v321_v60, %v204_v62  ;;  %v360_v3 = vpop.f32.mrb[3].mxu1 }
 0x117   :  { %v214_v4 = vmax.f32 %v213_v2, 0.0 }
 0x119   :  { %v215_v5 = vpack.c.bf16 %v214_v4, %v214_v4 }
 0x11b   :  { %378 = vmatmul.mubr.bf16.vlgmr.msra.gmra.mrb[4].mxu0 %v215_v5 }
 0x1ee   :  { %v254_v13 = vpop.f32.mrb[4].mxu0 }
 0x1ef   :  { %v255_v14 = vadd.f32 %v322_v12, %v254_v13  ;;  %v379_v15 = vpop.f32.mrb[5].mxu0 }
 0x1f0   :  { %v257_v16 = vpop.f32.mrb[6].mxu0 }
 0x1f1   :  { %v260_v17 = vmax.f32 %v255_v14, 0.0  ;;  %v380_v18 = vpop.f32.mrb[7].mxu0 }
 0x1f3   :  { %v261_v19 = vpack.c.bf16 %v260_v17, %v260_v17 }
 0x1f5   :  { %398 = vmatmul.mubr.bf16.vlgmr.msra.gmra.mrb[4].mxu1 %v261_v19 }
 0x2c8   :  { %v300_v21 = vpop.f32.mrb[4].mxu1 }
 0x2c9   :  { %v301_v22 = vadd.f32 %v323_v20, %v300_v21  ;;  %v399_v23 = vpop.f32.mrb[5].mxu1 }
 0x2ca   :  { %v303_v24 = vpop.f32.mrb[6].mxu1 }
 0x2cb   :  { %v400_v25 = vpop.f32.mrb[7].mxu1  ;;  %307 = vrot.lane.b32.xlu0 %v301_v22, %s486_s2 }
 0x33d   :  { %v308_v0 = vpop.permute.xlu0 %307 }
 0x33e   :  { %v310_v26 = vmin.f32 %v301_v22, %v308_v0 }
 0x340   :  { %312 = vst.msk [vmem:[%s576_s3] sm:$0xff] %vm311_vm4, %v310_v26 }
 0x341   :  { %317 = vsyncpa [#allocation3], 1 }
 0x342   :  { %318 = vsyncpa [#allocation5], 1 }

</bundles_post_ra>
